<compile_context>
chip_gen: v7x
topology: tpu7x:2x2x1
jax: 0.10.0
libtpu: 0.0.40
codegen_flags: <defaults>
</compile_context>

<pallas_src>
import jax
import jax.numpy as jnp
from jax.experimental import pallas as pl
from jax.experimental.pallas import tpu as pltpu


def _make_dma_copy_kernel(row_starts, row_sizes):
    """Builds a kernel copying an (N, F) HBM array to the HBM output with a few
    large contiguous HBM->HBM DMAs (no VMEM staging)."""

    def kernel(x_hbm, o_hbm, sems):
        copies = []
        for c, (start, size) in enumerate(zip(row_starts, row_sizes)):
            cp = pltpu.make_async_copy(
                x_hbm.at[pl.ds(start, size), :],
                o_hbm.at[pl.ds(start, size), :],
                sems.at[c],
            )
            cp.start()
            copies.append(cp)
        # All DMAs are in flight; now block on each completion.
        for cp in copies:
            cp.wait()

    return kernel


def flatten(feat: jax.Array) -> jax.Array:
    n = feat.shape[0]
    flat = 1
    for d in feat.shape[1:]:
        flat *= d

    # Row-major NCHW -> (N, C*H*W) relabeling done outside the kernel (free).
    x2d = feat.reshape(n, flat)
    itemsize = x2d.dtype.itemsize
    total_bytes = n * flat * itemsize

    # Split the row axis into a few large contiguous DMA descriptors so
    # multiple DMA engines can stream in parallel.  Each chunk covers whole
    # rows of a contiguous array, so every descriptor is one contiguous run.
    max_chunks = 8
    min_chunk_bytes = 1 << 20  # keep descriptors >= ~1 MiB
    num_chunks = max(1, min(max_chunks, n, total_bytes // min_chunk_bytes))
    base, rem = divmod(n, num_chunks)
    row_sizes = tuple(base + (1 if c < rem else 0) for c in range(num_chunks))
    row_starts = tuple(sum(row_sizes[:c]) for c in range(num_chunks))

    kernel = _make_dma_copy_kernel(row_starts, row_sizes)

    return pl.pallas_call(
        kernel,
        out_shape=jax.ShapeDtypeStruct((n, flat), feat.dtype),
        # Keep both operands in HBM; the kernel moves bytes with DMA engines
        # only, so no vmem_limit_bytes / tile shape tuning is needed on any
        # generation (v5e / v6e / v7x).
        in_specs=[pl.BlockSpec(memory_space=pl.ANY)],
        out_specs=pl.BlockSpec(memory_space=pl.ANY),
        scratch_shapes=[pltpu.SemaphoreType.DMA((num_chunks,))],
    )(x2d)


if __name__ == "__main__":
    key = jax.random.PRNGKey(0)

    # Primary check: small NCHW feature map (batch=2, channels=4, 16x16).
    x = jax.random.normal(key, (2, 4, 16, 16), dtype=jnp.float32)
    out = jax.block_until_ready(flatten(x))
    ref = x.reshape(x.shape[0], -1)
    assert out.shape == (2, 4 * 16 * 16), out.shape
    assert out.dtype == x.dtype
    assert jnp.array_equal(out, ref), "mismatch vs reference flatten (f32)"

    # Multi-chunk DMA path (~2 MiB total -> 2 row chunks).
    x2 = jax.random.normal(key, (16, 16, 64, 32), dtype=jnp.float32)
    out2 = jax.block_until_ready(flatten(x2))
    assert jnp.array_equal(out2, x2.reshape(16, -1)), "mismatch (multi-chunk)"

    # Non-128-multiple flat width + sub-32-bit dtype: still a plain
    # contiguous DMA, no masked stores involved.
    x3 = jax.random.normal(key, (4, 3, 10, 7), dtype=jnp.bfloat16)
    out3 = jax.block_until_ready(flatten(x3))
    assert out3.shape == (4, 3 * 10 * 7)
    assert jnp.array_equal(out3, x3.reshape(4, -1)), "mismatch (bf16 ragged)"

    print("KERNEL_OK")
</pallas_src>

<mosaic_0001>
module attributes {stable_mosaic.version = 11 : i64} {
  func.func @kernel(%arg0: memref<2x1024xf32, #tpu.memory_space<any>>, %arg1: memref<2x1024xf32, #tpu.memory_space<any>>, %arg2: memref<1x!tpu.dma_semaphore, #tpu.memory_space<semaphore_mem>>) attributes {dimension_semantics = [], scalar_prefetch = 0 : i64, scratch_operands = 1 : i64, tpu.core_type = #tpu.core_type<tc>} {
    %c0_i32 = arith.constant 0 : i32
    %c0_i32_0 = arith.constant 0 : i32
    %c0_i32_1 = arith.constant 0 : i32
    %0 = tpu.memref_slice %arg0[%c0_i32_0, %c0_i32_1] : memref<2x1024xf32, #tpu.memory_space<any>> -> memref<2x1024xf32, #tpu.memory_space<any>>
    %c0_i32_2 = arith.constant 0 : i32
    %c0_i32_3 = arith.constant 0 : i32
    %1 = tpu.memref_slice %arg1[%c0_i32_2, %c0_i32_3] : memref<2x1024xf32, #tpu.memory_space<any>> -> memref<2x1024xf32, #tpu.memory_space<any>>
    %2 = tpu.memref_slice %arg2[%c0_i32] : memref<1x!tpu.dma_semaphore, #tpu.memory_space<semaphore_mem>> -> memref<1x!tpu.dma_semaphore, #tpu.memory_space<semaphore_mem>>
    %3 = tpu.memref_squeeze %2 : memref<1x!tpu.dma_semaphore, #tpu.memory_space<semaphore_mem>> -> memref<!tpu.dma_semaphore, #tpu.memory_space<semaphore_mem>>
    tpu.enqueue_dma source(%0 : memref<2x1024xf32, #tpu.memory_space<any>>) target(%1 : memref<2x1024xf32, #tpu.memory_space<any>>) target_semaphore(%3 : memref<!tpu.dma_semaphore, #tpu.memory_space<semaphore_mem>>)
    %c0_i32_4 = arith.constant 0 : i32
    %c0_i32_5 = arith.constant 0 : i32
    %c0_i32_6 = arith.constant 0 : i32
    %4 = tpu.memref_slice %arg0[%c0_i32_5, %c0_i32_6] : memref<2x1024xf32, #tpu.memory_space<any>> -> memref<2x1024xf32, #tpu.memory_space<any>>
    %c0_i32_7 = arith.constant 0 : i32
    %c0_i32_8 = arith.constant 0 : i32
    %5 = tpu.memref_slice %arg1[%c0_i32_7, %c0_i32_8] : memref<2x1024xf32, #tpu.memory_space<any>> -> memref<2x1024xf32, #tpu.memory_space<any>>
    %6 = tpu.memref_slice %arg2[%c0_i32_4] : memref<1x!tpu.dma_semaphore, #tpu.memory_space<semaphore_mem>> -> memref<1x!tpu.dma_semaphore, #tpu.memory_space<semaphore_mem>>
    %7 = tpu.memref_squeeze %6 : memref<1x!tpu.dma_semaphore, #tpu.memory_space<semaphore_mem>> -> memref<!tpu.dma_semaphore, #tpu.memory_space<semaphore_mem>>
    tpu.wait_dma2 semaphore(%7 : memref<!tpu.dma_semaphore, #tpu.memory_space<semaphore_mem>>) src(%4 : memref<2x1024xf32, #tpu.memory_space<any>>) dst(%5 : memref<2x1024xf32, #tpu.memory_space<any>>)
    return
  }
}

</mosaic_0001>

<bundles_post_ra>
// kernel: tpu_custom_call.1
= control target key start
LH: loop header
LB: loop body
LE: loop exit
PB: predicated region body
PF: predicated region fallthrough
CT: control target
= control target key end

     0   :  { %s35_s6 = smov [#allocation2]   ;;  %s36_s7 = smov [#allocation3]   ;;  %s54_s0 = inlined_call_operand.hbm [shape: f32[2,1024], index: 0, kind: input, shape index: {}]   ;;  %s55_s1 = inlined_call_operand.hbm [shape: f32[2,1024], index: 1, kind: output, shape index: {}]  }
   0x1   :  { %s37_s8 = smov 0  }
   0x2   :  { %18 = dma.general %s54_s0, 256, %s55_s1, %s35_s6, %s36_s7, [#allocation4], %s37_s8, 0  }
   0x3   :  { %33 = dma.done.wait [#allocation2], 256 }
   0x4   :  { %34 = vsyncadd [#allocation2], 4294967040 }
   0x5   :  { %23 = vsyncmov [#allocation2] }
   0x8   :  { %s24_s13 = vpop.sfrf %23 }
   0x9   :  { %p29_p0 = scmp.ne.s32.totalorder %s24_s13, 0 }
   0xb   :  { %28 = shalt.err (%p29_p0)  }

</bundles_post_ra>
